<compile_context>
chip_gen: v6e
topology: v6e:2x2x1
jax: 0.10.0
libtpu: 0.0.40
codegen_flags: <defaults>
</compile_context>

<pallas_src>
import jax
import jax.numpy as jnp
from jax.experimental import pallas as pl
from jax.experimental.pallas import tpu as pltpu

IN_DIM = 33
HIDDEN_DIM = 200
NUM_LAYERS = 2
NUM_CLASSES = 7
BN_EPS = 1e-5


def _round_up(x, m):
    return ((x + m - 1) // m) * m


def _mlp_kernel(x_ref, w1_ref, b1_ref, w2_ref, b2_ref, wc_ref, bc_ref, out_ref):
    # x_ref: (TB, IN_DIM) f32 tile (BatchNorm already folded into w1/b1).
    # w*_ref: bf16 weights, b*_ref: f32 biases -- VMEM-resident (constant index_maps).
    x = x_ref[...]

    h1 = jnp.dot(x.astype(jnp.bfloat16), w1_ref[...],
                 preferred_element_type=jnp.float32) + b1_ref[...]
    h1 = jnp.maximum(h1.astype(jnp.bfloat16), 0)          # ReLU fused with bf16 cast

    h2 = jnp.dot(h1, w2_ref[...],
                 preferred_element_type=jnp.float32) + b2_ref[...]
    h2 = jnp.maximum(h2.astype(jnp.bfloat16), 0)

    out = jnp.dot(h2, wc_ref[...],
                  preferred_element_type=jnp.float32) + bc_ref[...]
    out_ref[...] = out.astype(out_ref.dtype)


def mlp_classifier_forward(h, params, *, block_b=1024):
    """h: (B, IN_DIM) float32. Returns (B, NUM_CLASSES) float32 logits.

    Matches PyTorch MLPClassifier.forward with BatchNorm1d in training mode
    (full-batch mean, biased batch variance); gamma/beta taken from params.
    """
    gamma, beta, w1, b1, w2, b2, wc, bc = params
    B = h.shape[0]

    # --- BatchNorm1d (training-mode, full-batch stats), single pass over h ---
    mean = jnp.mean(h, axis=0, keepdims=True)
    mean_sq = jnp.mean(h * h, axis=0, keepdims=True)
    var = jnp.maximum(mean_sq - mean * mean, 0.0)          # biased batch variance
    scale = gamma * jax.lax.rsqrt(var + BN_EPS)             # (1, IN_DIM)
    shift = beta - mean * scale                             # (1, IN_DIM)
    w1_eff = (scale.reshape(IN_DIM, 1) * w1).astype(jnp.bfloat16)
    b1_eff = shift @ w1 + b1                                 # (1, HIDDEN) f32
    w2_bf = w2.astype(jnp.bfloat16)
    wc_bf = wc.astype(jnp.bfloat16)

    # --- batch tile selection ---
    #  * multiple of 8 (sublane granularity),
    #  * capped at 1024 (v5e 16 MiB scoped-VMEM headroom),
    #  * >= 2 grid steps when B allows (v7x has 2 TensorCores on the parallel axis),
    #  * no jnp.pad: partial last tile handled by Pallas boundary blocks.
    tb = _round_up(min(block_b, 1024, _round_up(B, 8)), 8)
    if B > 8 and pl.cdiv(B, tb) < 2:
        tb = max(8, _round_up(pl.cdiv(B, 2), 8))
    grid = (pl.cdiv(B, tb),)

    def const(shape):  # weights/biases: same block every grid step -> DMA'd once
        n = len(shape)
        return pl.BlockSpec(shape, lambda i, _n=n: (0,) * _n)

    macs = IN_DIM * HIDDEN_DIM + HIDDEN_DIM * HIDDEN_DIM + HIDDEN_DIM * NUM_CLASSES
    weight_bytes = 2 * macs + 4 * (2 * HIDDEN_DIM + NUM_CLASSES)
    cost = pl.CostEstimate(
        flops=2 * B * macs,
        transcendentals=0,
        bytes_accessed=B * (IN_DIM + NUM_CLASSES) * 4 + weight_bytes,
    )

    out = pl.pallas_call(
        _mlp_kernel,
        out_shape=jax.ShapeDtypeStruct((B, NUM_CLASSES), jnp.float32),
        grid=grid,
        in_specs=[
            pl.BlockSpec((tb, IN_DIM), lambda i: (i, 0)),
            const(w1_eff.shape), const(b1_eff.shape),
            const(w2_bf.shape), const(b2.shape),
            const(wc_bf.shape), const(bc.shape),
        ],
        out_specs=pl.BlockSpec((tb, NUM_CLASSES), lambda i: (i, 0)),
        compiler_params=pltpu.CompilerParams(
            dimension_semantics=("parallel",)),
        cost_estimate=cost,
    )(h, w1_eff, b1_eff, w2_bf, b2, wc_bf, bc)
    return out


def init_params(key):
    """Deterministic init mirroring PyTorch nn.Linear (U[-1/sqrt(fan_in), 1/sqrt(fan_in)])
    and nn.BatchNorm1d (gamma=1, beta=0). All params stored f32."""
    def linear(key, fan_in, fan_out):
        kw, kb = jax.random.split(key)
        bound = 1.0 / jnp.sqrt(fan_in)
        w = jax.random.uniform(kw, (fan_in, fan_out), jnp.float32, -bound, bound)
        b = jax.random.uniform(kb, (1, fan_out), jnp.float32, -bound, bound)
        return w, b

    k1, k2, k3 = jax.random.split(key, 3)
    gamma = jnp.ones((1, IN_DIM), jnp.float32)
    beta = jnp.zeros((1, IN_DIM), jnp.float32)
    w1, b1 = linear(k1, IN_DIM, HIDDEN_DIM)       # layers[0]: Linear(33, 200)
    w2, b2 = linear(k2, HIDDEN_DIM, HIDDEN_DIM)   # layers[1]: Linear(200, 200)
    wc, bc = linear(k3, HIDDEN_DIM, NUM_CLASSES)  # classify:  Linear(200, 7)
    return gamma, beta, w1, b1, w2, b2, wc, bc


def _reference_f32(h, params):
    """Pure f32 reference matching the PyTorch module (training-mode BN, two-pass var)."""
    gamma, beta, w1, b1, w2, b2, wc, bc = params
    mean = jnp.mean(h, axis=0, keepdims=True)
    var = jnp.mean((h - mean) ** 2, axis=0, keepdims=True)
    hn = (h - mean) / jnp.sqrt(var + BN_EPS) * gamma + beta
    h1 = jnp.maximum(hn @ w1 + b1, 0.0)
    h2 = jnp.maximum(h1 @ w2 + b2, 0.0)
    return h2 @ wc + bc


def _reference_bf16(h, params):
    """Reference with the same bf16 quantization / BN folding / one-pass var as the kernel."""
    gamma, beta, w1, b1, w2, b2, wc, bc = params
    mean = jnp.mean(h, axis=0, keepdims=True)
    mean_sq = jnp.mean(h * h, axis=0, keepdims=True)
    var = jnp.maximum(mean_sq - mean * mean, 0.0)
    scale = gamma * jax.lax.rsqrt(var + BN_EPS)
    shift = beta - mean * scale
    w1e = (scale.reshape(IN_DIM, 1) * w1).astype(jnp.bfloat16)
    b1e = shift @ w1 + b1

    def mm(a, w):
        return jnp.dot(a, w, preferred_element_type=jnp.float32)

    h1 = jnp.maximum((mm(h.astype(jnp.bfloat16), w1e) + b1e).astype(jnp.bfloat16), 0)
    h2 = jnp.maximum((mm(h1, w2.astype(jnp.bfloat16)) + b2).astype(jnp.bfloat16), 0)
    return mm(h2, wc.astype(jnp.bfloat16)) + bc


if __name__ == "__main__":
    key = jax.random.PRNGKey(0)
    k_params, k_x1, k_x2 = jax.random.split(key, 3)
    params = init_params(k_params)
    fwd = jax.jit(mlp_classifier_forward)

    # Case 1: B=512 -> two full (256, 33) tiles (>=2 grid steps for megacore).
    B1 = 512
    h1 = jax.random.normal(k_x1, (B1, IN_DIM), jnp.float32)
    out1 = jax.block_until_ready(fwd(h1, params))
    assert out1.shape == (B1, NUM_CLASSES)
    assert jnp.allclose(out1, _reference_bf16(h1, params), atol=5e-3, rtol=5e-3), \
        "mismatch vs bf16-matched reference (B=512)"
    assert jnp.allclose(out1, _reference_f32(h1, params), atol=5e-2, rtol=5e-2), \
        "mismatch vs f32 reference (B=512)"

    # Case 2: B=200 -> partial last tile (no jnp.pad; boundary block handling).
    B2 = 200
    h2 = jax.random.normal(k_x2, (B2, IN_DIM), jnp.float32)
    out2 = jax.block_until_ready(fwd(h2, params))
    assert out2.shape == (B2, NUM_CLASSES)
    assert jnp.allclose(out2, _reference_bf16(h2, params), atol=5e-3, rtol=5e-3), \
        "mismatch vs bf16-matched reference (B=200)"
    assert jnp.allclose(out2, _reference_f32(h2, params), atol=5e-2, rtol=5e-2), \
        "mismatch vs f32 reference (B=200)"

    print("KERNEL_OK")
</pallas_src>

<mosaic_0001>
module attributes {stable_mosaic.version = 11 : i64} {
  func.func @_mlp_kernel(%arg0: i32, %arg1: memref<256x33xf32, #tpu.memory_space<vmem>>, %arg2: memref<33x200xbf16, #tpu.memory_space<vmem>>, %arg3: memref<1x200xf32, #tpu.memory_space<vmem>>, %arg4: memref<200x200xbf16, #tpu.memory_space<vmem>>, %arg5: memref<1x200xf32, #tpu.memory_space<vmem>>, %arg6: memref<200x7xbf16, #tpu.memory_space<vmem>>, %arg7: memref<1x7xf32, #tpu.memory_space<vmem>>, %arg8: memref<256x7xf32, #tpu.memory_space<vmem>>) attributes {dimension_semantics = [#tpu.dimension_semantics<parallel>], iteration_bounds = array<i64: 2>, scalar_prefetch = 0 : i64, scratch_operands = 0 : i64, tpu.core_type = #tpu.core_type<tc>, window_params = [{transform_indices = @transform_0, window_bounds = array<i64: 256, 33>}, {pipeline_mode = #tpu.pipeline_mode<synchronous>, transform_indices = @transform_1, window_bounds = array<i64: 33, 200>}, {pipeline_mode = #tpu.pipeline_mode<synchronous>, transform_indices = @transform_2, window_bounds = array<i64: 1, 200>}, {pipeline_mode = #tpu.pipeline_mode<synchronous>, transform_indices = @transform_3, window_bounds = array<i64: 200, 200>}, {pipeline_mode = #tpu.pipeline_mode<synchronous>, transform_indices = @transform_4, window_bounds = array<i64: 1, 200>}, {pipeline_mode = #tpu.pipeline_mode<synchronous>, transform_indices = @transform_5, window_bounds = array<i64: 200, 7>}, {pipeline_mode = #tpu.pipeline_mode<synchronous>, transform_indices = @transform_6, window_bounds = array<i64: 1, 7>}, {transform_indices = @transform_7, window_bounds = array<i64: 256, 7>}]} {
    %c0 = arith.constant 0 : index
    %c0_0 = arith.constant 0 : index
    %0 = vector.load %arg1[%c0, %c0_0] : memref<256x33xf32, #tpu.memory_space<vmem>>, vector<256x33xf32>
    %1 = arith.truncf %0 : vector<256x33xf32> to vector<256x33xbf16>
    %c0_1 = arith.constant 0 : index
    %c0_2 = arith.constant 0 : index
    %2 = vector.load %arg2[%c0_1, %c0_2] : memref<33x200xbf16, #tpu.memory_space<vmem>>, vector<33x200xbf16>
    %cst = arith.constant dense<0.000000e+00> : vector<256x200xf32>
    %3 = tpu.matmul %1, %2, %cst {dimension_numbers = #tpu.dot_dimension_numbers<[1], [0], [0], [1], [0, 0, 1, 1], [], []>} : vector<256x33xbf16>, vector<33x200xbf16>, vector<256x200xf32> -> vector<256x200xf32>
    %c0_3 = arith.constant 0 : index
    %c0_4 = arith.constant 0 : index
    %4 = vector.load %arg3[%c0_3, %c0_4] : memref<1x200xf32, #tpu.memory_space<vmem>>, vector<1x200xf32>
    %5 = vector.broadcast %4 : vector<1x200xf32> to vector<256x200xf32>
    %6 = arith.addf %3, %5 : vector<256x200xf32>
    %7 = arith.truncf %6 : vector<256x200xf32> to vector<256x200xbf16>
    %cst_5 = arith.constant 0.000000e+00 : bf16
    %8 = vector.broadcast %cst_5 : bf16 to vector<256x200xbf16>
    %9 = arith.maximumf %7, %8 : vector<256x200xbf16>
    %c0_6 = arith.constant 0 : index
    %c0_7 = arith.constant 0 : index
    %10 = vector.load %arg4[%c0_6, %c0_7] : memref<200x200xbf16, #tpu.memory_space<vmem>>, vector<200x200xbf16>
    %cst_8 = arith.constant dense<0.000000e+00> : vector<256x200xf32>
    %11 = tpu.matmul %9, %10, %cst_8 {dimension_numbers = #tpu.dot_dimension_numbers<[1], [0], [0], [1], [0, 0, 1, 1], [], []>} : vector<256x200xbf16>, vector<200x200xbf16>, vector<256x200xf32> -> vector<256x200xf32>
    %c0_9 = arith.constant 0 : index
    %c0_10 = arith.constant 0 : index
    %12 = vector.load %arg5[%c0_9, %c0_10] : memref<1x200xf32, #tpu.memory_space<vmem>>, vector<1x200xf32>
    %13 = vector.broadcast %12 : vector<1x200xf32> to vector<256x200xf32>
    %14 = arith.addf %11, %13 : vector<256x200xf32>
    %15 = arith.truncf %14 : vector<256x200xf32> to vector<256x200xbf16>
    %cst_11 = arith.constant 0.000000e+00 : bf16
    %16 = vector.broadcast %cst_11 : bf16 to vector<256x200xbf16>
    %17 = arith.maximumf %15, %16 : vector<256x200xbf16>
    %c0_12 = arith.constant 0 : index
    %c0_13 = arith.constant 0 : index
    %18 = vector.load %arg6[%c0_12, %c0_13] : memref<200x7xbf16, #tpu.memory_space<vmem>>, vector<200x7xbf16>
    %cst_14 = arith.constant dense<0.000000e+00> : vector<256x7xf32>
    %19 = tpu.matmul %17, %18, %cst_14 {dimension_numbers = #tpu.dot_dimension_numbers<[1], [0], [0], [1], [0, 0, 1, 1], [], []>} : vector<256x200xbf16>, vector<200x7xbf16>, vector<256x7xf32> -> vector<256x7xf32>
    %c0_15 = arith.constant 0 : index
    %c0_16 = arith.constant 0 : index
    %20 = vector.load %arg7[%c0_15, %c0_16] : memref<1x7xf32, #tpu.memory_space<vmem>>, vector<1x7xf32>
    %21 = vector.broadcast %20 : vector<1x7xf32> to vector<256x7xf32>
    %22 = arith.addf %19, %21 : vector<256x7xf32>
    %c0_17 = arith.constant 0 : index
    %c0_18 = arith.constant 0 : index
    %23 = vector.load %arg8[%c0_17, %c0_18] : memref<256x7xf32, #tpu.memory_space<vmem>>, vector<256x7xf32>
    tpu.vector_store %arg8[%c0_17, %c0_18], %22 {strides = array<i32>} : memref<256x7xf32, #tpu.memory_space<vmem>>, vector<256x7xf32>,
    return
  }
  func.func @transform_0(%arg0: i32) -> (i32, i32) {
    %c0_i32 = arith.constant 0 : i32
    %c0_i32_0 = arith.constant 0 : i32
    return %arg0, %c0_i32 : i32, i32
  }
  func.func @transform_1(%arg0: i32) -> (i32, i32) {
    %c0_i32 = arith.constant 0 : i32
    %c0_i32_0 = arith.constant 0 : i32
    %c0_i32_1 = arith.constant 0 : i32
    return %c0_i32, %c0_i32_0 : i32, i32
  }
  func.func @transform_2(%arg0: i32) -> (i32, i32) {
    %c0_i32 = arith.constant 0 : i32
    %c0_i32_0 = arith.constant 0 : i32
    %c0_i32_1 = arith.constant 0 : i32
    return %c0_i32, %c0_i32_0 : i32, i32
  }
  func.func @transform_3(%arg0: i32) -> (i32, i32) {
    %c0_i32 = arith.constant 0 : i32
    %c0_i32_0 = arith.constant 0 : i32
    %c0_i32_1 = arith.constant 0 : i32
    return %c0_i32, %c0_i32_0 : i32, i32
  }
  func.func @transform_4(%arg0: i32) -> (i32, i32) {
    %c0_i32 = arith.constant 0 : i32
    %c0_i32_0 = arith.constant 0 : i32
    %c0_i32_1 = arith.constant 0 : i32
    return %c0_i32, %c0_i32_0 : i32, i32
  }
  func.func @transform_5(%arg0: i32) -> (i32, i32) {
    %c0_i32 = arith.constant 0 : i32
    %c0_i32_0 = arith.constant 0 : i32
    %c0_i32_1 = arith.constant 0 : i32
    return %c0_i32, %c0_i32_0 : i32, i32
  }
  func.func @transform_6(%arg0: i32) -> (i32, i32) {
    %c0_i32 = arith.constant 0 : i32
    %c0_i32_0 = arith.constant 0 : i32
    %c0_i32_1 = arith.constant 0 : i32
    return %c0_i32, %c0_i32_0 : i32, i32
  }
  func.func @transform_7(%arg0: i32) -> (i32, i32) {
    %c0_i32 = arith.constant 0 : i32
    %c0_i32_0 = arith.constant 0 : i32
    return %arg0, %c0_i32 : i32, i32
  }
}

</mosaic_0001>

<bundles_post_ra>
// kernel: mlp_classifier_forward.1
= control target key start
LH: loop header
LB: loop body
LE: loop exit
PB: predicated region body
PF: predicated region fallthrough
CT: control target
= control target key end

     0   :  { %s1800_s24 = smov 0   ;;  %s2449_s0 = inlined_call_operand.vmem [shape: f32[512,33], index: 0, kind: input, shape index: {}]   ;;  %s2450_s1 = inlined_call_operand.vmem [shape: bf16[33,200], index: 1, kind: input, shape index: {}]   ;;  %s2451_s2 = inlined_call_operand.vmem [shape: f32[1,200], index: 2, kind: input, shape index: {}]   ;;  %s2452_s3 = inlined_call_operand.vmem [shape: bf16[200,200], index: 3, kind: input, shape index: {}]   ;;  %s2453_s4 = inlined_call_operand.vmem [shape: f32[1,200], index: 4, kind: input, shape index: {}]   ;;  %s2454_s5 = inlined_call_operand.vmem [shape: bf16[200,7], index: 5, kind: input, shape index: {}]   ;;  %s2455_s6 = inlined_call_operand.vmem [shape: f32[1,7], index: 6, kind: input, shape index: {}]   ;;  %s2456_s7 = inlined_call_operand.vmem [shape: f32[512,7], index: 7, kind: output, shape index: {}]  }
   0x1 LB: > { %s1571_s25 = sadd.s32 4294967295, %s1757_s24   ;;  %p1575_p0 = scmp.ge.s32.totalorder %s1757_s24, 1  ;;  %s1757_s24 = sphi %s1800_s24, %s17_s24  }
   0x2   : > { %p238_p1 = scmp.lt.s32.totalorder %s1757_s24, 3 }
   0x4   : > { %p239_p2 = pnand %p1575_p0, %p238_p1 }
   0x5   : > { %s1576_s28 = sshll.u32 (!%p239_p2), %s1571_s25, 5 }
   0x6   : > { %242 = sbr.rel (%p239_p2) target bundleno = 760 (0x2f8), region = 48  ;;  %p271_p3 = scmp.lt.s32.totalorder (!%p239_p2), %s1576_s28, 63 }
   0xb   : > { %v335_v0 = vld [vmem:[%s2450_s1 + $0x20] sm:$0x11]  ;;  %vm422_vm0 = vcmask 1040384   ;;  %v1759_v2 = vmov 0   ;;  %v1694_v7 = vld [vmem:[%s2450_s1 + $0x14] ss:$8 sps:$4 sm:$0xff]  }
   0xc   : > { %v1585_v1 = vcombine.high %v335_v0, %v335_v0  ;;  %v424_v3 = vsel %vm422_vm0, 65535, %v1759_v2  ;;  %v1584_v4 = vcombine.low %v335_v0, %v335_v0  ;;  %463 = vmatprep.mubr.bf16.mxu0 %v1759_v2  ;;  %543 = vmatprep.mubr.bf16.mxu1 %v1759_v2  ;;  %s2458_s28 = smov (!%p271_p3, %s1576_s28), 63  ;;  %v1696_v8 = vld [vmem:[%s2450_s1 + $0x10] ss:$8 sps:$4 sm:$0xff]   ;;  %v1697_v9 = vld [vmem:[%s2450_s1 + $0x4] ss:$8 sps:$4 sm:$0xff]  }
   0xd   : > { %s1577_s12 = sshll.u32 %s2458_s28, 3  ;;  %v1699_v10 = vld [vmem:[%s2450_s1] ss:$8 sps:$4 sm:$0xff]   ;;  %v1702_v13 = vld [vmem:[%s2452_s3 + $0x74] ss:$8 sps:$4 sm:$0xff]   ;;  %vm373_vm1 = vcmask 269312  }
   0xe   : > { %v429_v5 = vand.u32 %v1585_v1, %v424_v3  ;;  %v426_v6 = vand.u32 %v1584_v4, %v424_v3  ;;  %s1831_s15 = scalar_lea.vmem %s2449_s0, %s1577_s12  ;;  %v1700_v18 = vld [vmem:[%s2452_s3 + $0x70] ss:$8 sps:$4 sm:$0xff]   ;;  %v1705_v19 = vld [vmem:[%s2452_s3 + $0x64] ss:$8 sps:$4 sm:$0xff]   ;;  %v1703_v24 = vld [vmem:[%s2452_s3 + $0x60] ss:$8 sps:$4 sm:$0xff]   ;;  %s2348_s25 = scalar_lea.vmem %s2456_s7, %s1577_s12 }
   0xf   : > { %v283_v11 = vld [vmem:[%s1831_s15] sm:$0xff]  ;;  %v284_v12 = vld [vmem:[%s1831_s15 + $0x8] sm:$0xff]  ;;  %v285_v20 = vld [vmem:[%s1831_s15 + $0x10] sm:$0xff]  ;;  %vm899_vm2 = vcmask 1043456   ;;  %vm850_vm3 = vcmask 588800   ;;  %vm1482_vm4 = vcmask 56320  }
  0x10   : > { %441 = vmatprep.subr.bf16.mxu0 %v429_v5  ;;  %1677 = vmatprep.subr.bf16.mxu1 %v429_v5  ;;  %v315_v14 = vpack.c.bf16 %v284_v12, %v283_v11  ;;  %v299_v15 = vld [vmem:[%s1831_s15 + $0x80] sm:$0xff]  ;;  %v300_v16 = vld [vmem:[%s1831_s15 + $0x88] sm:$0xff]  ;;  %v286_v21 = vld [vmem:[%s1831_s15 + $0x18] sm:$0xff] }
  0x11   : > { %442 = vmatpush1.bf16.msra.mxu0 %v426_v6  ;;  %1680 = vmatpush1.bf16.msra.mxu1 %v426_v6  ;;  %v323_v17 = vpack.c.bf16 %v300_v16, %v299_v15  ;;  %v301_v22 = vld [vmem:[%s1831_s15 + $0x90] sm:$0xff]  ;;  %v302_v23 = vld [vmem:[%s1831_s15 + $0x98] sm:$0xff]  ;;  %v316_v26 = vpack.c.bf16 %v286_v21, %v285_v20  ;;  %v287_v29 = vld [vmem:[%s1831_s15 + $0x20] sm:$0xff] }
  0x12   : > { %443 = vmatprep.subr.bf16.mxu0 %v1694_v7  ;;  %1678 = vmatprep.subr.bf16.mxu1 %v1694_v7  ;;  %v1708_v25 = vld [vmem:[%s2452_s3 + $0x54] ss:$8 sps:$4 sm:$0xff]   ;;  %v324_v27 = vpack.c.bf16 %v302_v23, %v301_v22  ;;  %v1706_v28 = vld [vmem:[%s2452_s3 + $0x50] ss:$8 sps:$4 sm:$0xff]   ;;  %v1711_v30 = vld [vmem:[%s2452_s3 + $0x44] ss:$8 sps:$4 sm:$0xff]  }
  0x13   : > { %v288_v31 = vld [vmem:[%s1831_s15 + $0x28] sm:$0xff]  ;;  %v303_v32 = vld [vmem:[%s1831_s15 + $0xa0] sm:$0xff]  ;;  %v1714_v35 = vld [vmem:[%s2452_s3 + $0x34] ss:$8 sps:$4 sm:$0xff]  }
  0x14   : > { %v304_v33 = vld [vmem:[%s1831_s15 + $0xa8] sm:$0xff]  ;;  %v317_v36 = vpack.c.bf16 %v288_v31, %v287_v29  ;;  %v1712_v38 = vld [vmem:[%s2452_s3 + $0x30] ss:$8 sps:$4 sm:$0xff]   ;;  %v1720_v45 = vld [vmem:[%s2452_s3 + $0x14] ss:$8 sps:$4 sm:$0xff]  }
  0x15   : > { %444 = vmatpush1.bf16.msra.mxu0 %v1696_v8  ;;  %1681 = vmatpush1.bf16.msra.mxu1 %v1696_v8  ;;  %v1709_v34 = vld [vmem:[%s2452_s3 + $0x40] ss:$8 sps:$4 sm:$0xff]   ;;  %v325_v37 = vpack.c.bf16 %v304_v33, %v303_v32  ;;  %v1717_v39 = vld [vmem:[%s2452_s3 + $0x24] ss:$8 sps:$4 sm:$0xff]   ;;  %v289_v40 = vld [vmem:[%s1831_s15 + $0x30] sm:$0xff] }
  0x16   : > { %445 = vmatprep.subr.bf16.mxu0 %v1697_v9  ;;  %1679 = vmatprep.subr.bf16.mxu1 %v1697_v9  ;;  %v290_v41 = vld [vmem:[%s1831_s15 + $0x38] sm:$0xff]  ;;  %v305_v42 = vld [vmem:[%s1831_s15 + $0xb0] sm:$0xff]  ;;  %v1715_v44 = vld [vmem:[%s2452_s3 + $0x20] ss:$8 sps:$4 sm:$0xff]  }
  0x17   : > { %v306_v43 = vld [vmem:[%s1831_s15 + $0xb8] sm:$0xff]  ;;  %v318_v46 = vpack.c.bf16 %v290_v41, %v289_v40  ;;  %v1723_v49 = vld [vmem:[%s2452_s3 + $0x4] ss:$8 sps:$4 sm:$0xff]   ;;  %v1721_v55 = vld [vmem:[%s2452_s3] ss:$8 sps:$4 sm:$0xff]  }
  0x18   : > { %v326_v47 = vpack.c.bf16 %v306_v43, %v305_v42  ;;  %v1718_v48 = vld [vmem:[%s2452_s3 + $0x10] ss:$8 sps:$4 sm:$0xff]   ;;  %v291_v50 = vld [vmem:[%s1831_s15 + $0x40] sm:$0xff]  ;;  %v292_v52 = vld [vmem:[%s1831_s15 + $0x48] sm:$0xff] }
  0x19   : > { %446 = vmatpush1.bf16.msra.mxu0 %v1699_v10  ;;  %1682 = vmatpush1.bf16.msra.mxu1 %v1699_v10  ;;  %v712_v51 = vld [vmem:[%s2452_s3 + $0xc0] sm:$0xff]  ;;  %v308_v54 = vld [vmem:[%s1831_s15 + $0xc8] sm:$0xff]  ;;  %v319_v58 = vpack.c.bf16 %v292_v52, %v291_v50  ;;  %v1728_v61 = vld [vmem:[%s2452_s3 + $0xb4] ss:$8 sps:$4 sm:$0xff]  }
  0x1a   : > { %906 = vmatprep.subr.bf16.mxu1 %v1702_v13  ;;  %1321 = vmatprep.subr.bf16.mxu0 %v1759_v2  ;;  %v307_v53 = vld [vmem:[%s1831_s15 + $0xc0] sm:$0xff]  ;;  %v1627_v56 = vcombine.high %v712_v51, %v712_v51  ;;  %v1626_v57 = vcombine.low %v712_v51, %v712_v51  ;;  %v293_v62 = vld [vmem:[%s1831_s15 + $0x50] sm:$0xff]  ;;  %v294_v63 = vld [vmem:[%s1831_s15 + $0x58] sm:$0xff] }
  0x1b   : > { %v327_v59 = vpack.c.bf16 %v308_v54, %v307_v53  ;;  %v309_v0 = vld [vmem:[%s1831_s15 + $0xd0] sm:$0xff]  ;;  %v310_v1 = vld [vmem:[%s1831_s15 + $0xd8] sm:$0xff]  ;;  %v1731_v4 = vld [vmem:[%s2452_s3 + $0xa4] ss:$8 sps:$4 sm:$0xff]   ;;  %v320_v5 = vpack.c.bf16 %v294_v63, %v293_v62 }
  0x1c   : > { %1586 = vmatmul.mubr.msk.bf16.vlgmr.msra.gmra.mxu0 %vm373_vm1, %v315_v14  ;;  %1594 = vmatmul.mubr.msk.bf16.vlgmr.msra.gmra.mxu1 %vm373_vm1, %v323_v17  ;;  %v901_v60 = vsel %vm899_vm2, %v1626_v57, 0  ;;  %v1726_v3 = vld [vmem:[%s2452_s3 + $0xb0] ss:$8 sps:$4 sm:$0xff]   ;;  %v328_v6 = vpack.c.bf16 %v310_v1, %v309_v0  ;;  %v1729_v7 = vld [vmem:[%s2452_s3 + $0xa0] ss:$8 sps:$4 sm:$0xff]  }
  0x1d   : > { %473 = vmatprep.mubr.bf16.mxu0 %v1759_v2  ;;  %553 = vmatprep.mubr.bf16.mxu1 %v1759_v2  ;;  %v295_v8 = vld [vmem:[%s1831_s15 + $0x60] sm:$0xff]  ;;  %v296_v9 = vld [vmem:[%s1831_s15 + $0x68] sm:$0xff]  ;;  %v297_v14 = vld [vmem:[%s1831_s15 + $0x70] sm:$0xff] }
  0x1e   : > { %907 = vmatpush1.bf16.msra.mxu1 %v1700_v18  ;;  %v311_v10 = vld [vmem:[%s1831_s15 + $0xe0] sm:$0xff]  ;;  %v312_v11 = vld [vmem:[%s1831_s15 + $0xe8] sm:$0xff]  ;;  %v321_v12 = vpack.c.bf16 %v296_v9, %v295_v8  ;;  %v298_v15 = vld [vmem:[%s1831_s15 + $0x78] sm:$0xff] }
  0x1f   : > { %908 = vmatprep.subr.bf16.mxu1 %v1705_v19  ;;  %v329_v13 = vpack.c.bf16 %v312_v11, %v311_v10  ;;  %v313_v16 = vld [vmem:[%s1831_s15 + $0xf0] sm:$0xff]  ;;  %v314_v17 = vld [vmem:[%s1831_s15 + $0xf8] sm:$0xff]  ;;  %v322_v18 = vpack.c.bf16 %v298_v15, %v297_v14  ;;  %v1737_v22 = vld [vmem:[%s2452_s3 + $0x84] ss:$8 sps:$4 sm:$0xff]  }
  0x20   : > { %v330_v19 = vpack.c.bf16 %v314_v17, %v313_v16  ;;  %v1734_v20 = vld [vmem:[%s2452_s3 + $0x94] ss:$8 sps:$4 sm:$0xff]   ;;  %v1732_v21 = vld [vmem:[%s2452_s3 + $0x90] ss:$8 sps:$4 sm:$0xff]   ;;  %v1735_v23 = vld [vmem:[%s2452_s3 + $0x80] ss:$8 sps:$4 sm:$0xff]  }
  0x21   : > { %v1738_v41 = vld [vmem:[%s2454_s5 + $0x38] sm:$0xff]   ;;  %v1741_v0 = vld [vmem:[%s2454_s5 + $0x20] sm:$0xff]   ;;  %v1743_v17 = vld [vmem:[%s2454_s5 + $0x10] sm:$0xff]  }
  0x22   : > { %909 = vmatpush1.bf16.msra.mxu1 %v1703_v24  ;;  %v338_v24 = vlaneseq  ;;  %1322 = vmatpush1.bf16.msra.mxu0 %v1738_v41  ;;  %v1742_v8 = vld [vmem:[%s2454_s5 + $0x18] sm:$0xff]  }
  0x23   : > { %910 = vmatprep.subr.bf16.mxu1 %v1708_v25  ;;  %1323 = vmatprep.subr.bf16.mxu0 %v1759_v2 }
  0x24   : > { %1587 = vmatmul.mubr.msk.bf16.gmra.mxu0 %vm373_vm1, %v316_v26  ;;  %1595 = vmatmul.mubr.msk.bf16.gmra.mxu1 %vm373_vm1, %v324_v27  ;;  %v1976_v25 = vshrl.u32 %v338_v24, 7  ;;  %v336_v27 = vld [vmem:[%s2451_s2] sm:$0x3]  ;;  %v1744_v24 = vld [vmem:[%s2454_s5 + $0x8] sm:$0xff]  }
  0x25   : > { %483 = vmatprep.mubr.bf16.mxu0 %v1759_v2  ;;  %563 = vmatprep.mubr.bf16.mxu1 %v1759_v2 }
  0x26   : > { %911 = vmatpush1.bf16.msra.mxu1 %v1706_v28  ;;  %v340_v26 = vsub.s32 0, %v1976_v25  ;;  %v344_v28 = vsub.s32 1, %v1976_v25 }
  0x27   : > { %912 = vmatprep.subr.bf16.mxu1 %v1711_v30 }
  0x28   : > { %v1987_v31 = vrot.slane %v336_v27, %v340_v26 }
  0x2a   : > { %913 = vmatpush1.bf16.msra.mxu1 %v1709_v34  ;;  %v1993_v34 = vrot.slane %v336_v27, %v344_v28 }
  0x2b   : > { %914 = vmatprep.subr.bf16.mxu1 %v1714_v35 }
  0x2c   : > { %1588 = vmatmul.mubr.msk.bf16.gmra.mxu0 %vm373_vm1, %v317_v36  ;;  %1596 = vmatmul.mubr.msk.bf16.gmra.mxu1 %vm373_vm1, %v325_v37 }
  0x2d   : > { %493 = vmatprep.mubr.bf16.mxu0 %v1759_v2  ;;  %573 = vmatprep.mubr.bf16.mxu1 %v1759_v2 }
  0x2e   : > { %915 = vmatpush1.bf16.msra.mxu1 %v1712_v38 }
  0x2f   : > { %916 = vmatprep.subr.bf16.mxu1 %v1717_v39 }
  0x32   : > { %917 = vmatpush1.bf16.msra.mxu1 %v1715_v44 }
  0x33   : > { %918 = vmatprep.subr.bf16.mxu1 %v1720_v45 }
  0x34   : > { %1589 = vmatmul.mubr.msk.bf16.gmra.mxu0 %vm373_vm1, %v318_v46  ;;  %1597 = vmatmul.mubr.msk.bf16.gmra.mxu1 %vm373_vm1, %v326_v47  ;;  %v1739_v47 = vld [vmem:[%s2454_s5 + $0x30] sm:$0xff]  }
  0x35   : > { %503 = vmatprep.mubr.bf16.mxu0 %v1759_v2  ;;  %583 = vmatprep.mubr.bf16.mxu1 %v1759_v2 }
  0x36   : > { %919 = vmatpush1.bf16.msra.mxu1 %v1718_v48  ;;  %1324 = vmatpush1.bf16.msra.mxu0 %v1739_v47 }
  0x37   : > { %920 = vmatprep.subr.bf16.mxu1 %v1723_v49  ;;  %1325 = vmatprep.subr.bf16.mxu0 %v1759_v2 }
  0x3a   : > { %921 = vmatpush1.bf16.msra.mxu1 %v1721_v55  ;;  %v1740_v55 = vld [vmem:[%s2454_s5 + $0x28] sm:$0xff]  }
  0x3b   : > { %1628 = vmatprep.subr.msk.bf16.mxu1 %vm899_vm2, %v1627_v56  ;;  %1326 = vmatpush1.bf16.msra.mxu0 %v1740_v55 }
  0x3c   : > { %1590 = vmatmul.mubr.msk.bf16.gmra.mxu0 %vm373_vm1, %v319_v58  ;;  %1598 = vmatmul.mubr.msk.bf16.gmra.mxu1 %vm373_vm1, %v327_v59 }
  0x3d   : > { %513 = vmatprep.mubr.bf16.mxu0 %v1759_v2  ;;  %593 = vmatprep.mubr.bf16.mxu1 %v1759_v2 }
  0x3e   : > { %929 = vmatpush2.bf16.msra.mxu1 %v901_v60  ;;  %1327 = vmatprep.subr.bf16.mxu0 %v1759_v2 }
  0x3f   : > { %930 = vmatprep.subr.bf16.mxu1 %v1728_v61  ;;  %1328 = vmatpush1.bf16.msra.mxu0 %v1741_v0 }
  0x40   : > { %1329 = vmatprep.subr.bf16.mxu0 %v1759_v2 }
  0x42   : > { %931 = vmatpush2.bf16.msra.mxu1 %v1726_v3 }
  0x43   : > { %932 = vmatprep.subr.bf16.mxu1 %v1731_v4  ;;  %1330 = vmatpush1.bf16.msra.mxu0 %v1742_v8 }
  0x44   : > { %1591 = vmatmul.mubr.msk.bf16.gmra.mxu0 %vm373_vm1, %v320_v5  ;;  %1599 = vmatmul.mubr.msk.bf16.gmra.mxu1 %vm373_vm1, %v328_v6 }
  0x45   : > { %523 = vmatprep.mubr.bf16.mxu0 %v1759_v2  ;;  %603 = vmatprep.mubr.bf16.mxu1 %v1759_v2 }
  0x46   : > { %933 = vmatpush2.bf16.msra.mxu1 %v1729_v7  ;;  %1331 = vmatprep.subr.bf16.mxu0 %v1759_v2 }
  0x47   : > { %934 = vmatprep.subr.bf16.mxu1 %v1734_v20  ;;  %1332 = vmatpush1.bf16.msra.mxu0 %v1743_v17 }
  0x48   : > { %1333 = vmatprep.subr.bf16.mxu0 %v1759_v2 }
  0x4a   : > { %935 = vmatpush2.bf16.msra.mxu1 %v1732_v21 }
  0x4b   : > { %936 = vmatprep.subr.bf16.mxu1 %v1737_v22  ;;  %1334 = vmatpush1.bf16.msra.mxu0 %v1744_v24 }
  0x4c   : > { %1592 = vmatmul.mubr.msk.bf16.gmra.mxu0 %vm373_vm1, %v321_v12  ;;  %1600 = vmatmul.mubr.msk.bf16.gmra.mxu1 %vm373_vm1, %v329_v13 }
  0x4d   : > { %533 = vmatprep.mubr.bf16.mxu0 %v1759_v2  ;;  %613 = vmatprep.mubr.bf16.mxu1 %v1759_v2 }
  0x4e   : > { %937 = vmatpush2.bf16.msra.mxu1 %v1735_v23  ;;  %1335 = vmatprep.subr.bf16.mxu0 %v1759_v2 }
  0x54   : > { %1593 = vmatmul.mubr.msk.bf16.gmra.mxu0 %vm373_vm1, %v322_v18  ;;  %1601 = vmatmul.mubr.msk.bf16.gmra.mxu1 %vm373_vm1, %v330_v19 }
  0xdc   : > { %v465_v29 = vpop.f32.mrf.mxu0  ;;  %v1983_v30 = vpop.f32.mrf.mxu1 }
  0xdd   : > { %v466_v38 = vadd.f32 %v465_v29, %v1987_v31 }
  0xde   : > { %v467_v32 = vpop.f32.mrf.mxu0  ;;  %v1989_v33 = vpop.f32.mrf.mxu1 }
  0xdf   : > { %v468_v42 = vadd.f32 %v467_v32, %v1993_v34 }
  0xe0   : > { %v469_v35 = vpop.f32.mrf.mxu0  ;;  %v1995_v36 = vpop.f32.mrf.mxu1 }
  0xe1   : > { %v470_v37 = vadd.f32 %v469_v35, %v1987_v31 }
  0xe2   : > { %v471_v39 = vpop.f32.mrf.mxu0  ;;  %v1999_v40 = vpop.f32.mrf.mxu1 }
  0xe3   : > { %v472_v43 = vadd.f32 %v471_v39, %v1993_v34  ;;  %v624_v44 = vpack.c.bf16 %v470_v37, %v466_v38 }
  0xe4   : > { %v475_v45 = vpop.f32.mrf.mxu0  ;;  %v2006_v46 = vpop.f32.mrf.mxu1 }
  0xe5   : > { %v625_v48 = vpack.c.bf16 %v472_v43, %v468_v42  ;;  %v656_v52 = vmax.bf16 %v1759_v2, %v624_v44  ;;  %v476_v57 = vadd.f32 %v475_v45, %v1987_v31  ;;  %v1745_v42 = vld [vmem:[%s2454_s5] sm:$0xff]  }
  0xe6   : > { %v477_v49 = vpop.f32.mrf.mxu0  ;;  %v2012_v50 = vpop.f32.mrf.mxu1  ;;  %v1746_v44 = vld [vmem:[%s2454_s5 + $0x60] ss:$0 sps:$4 sm:$0xff]   ;;  %1336 = vmatpush1.bf16.msra.mxu0 %v1745_v42 }
  0xe7   : > { %v657_v51 = vmax.bf16 %v1759_v2, %v625_v48  ;;  %v478_v59 = vadd.f32 %v477_v49, %v1993_v34  ;;  %1343 = vmatprep.subr.bf16.mxu0 %v1759_v2 }
  0xe8   : > { %v479_v53 = vpop.f32.mrf.mxu0  ;;  %v2016_v54 = vpop.f32.mrf.mxu1 }
  0xe9   : > { %v480_v56 = vadd.f32 %v479_v53, %v1987_v31  ;;  %1629 = vmatprep.mubr.msk.bf16.mxu1 %vm850_vm3, %v657_v51  ;;  %v1319_v53 = vsel %vm899_vm2, %v1746_v44, 0 }
  0xea   : > { %v481_v58 = vpop.f32.mrf.mxu0  ;;  %939 = vmatmul.mubr.bf16.vlgmr.msra.gmra.mxu1 %v656_v52  ;;  %v2027_v63 = vpop.f32.mrf.mxu1  ;;  %1344 = vmatpush2.bf16.msra.mxu0 %v1319_v53 }
  0xeb   : > { %v482_v60 = vadd.f32 %v481_v58, %v1993_v34  ;;  %v626_v61 = vpack.c.bf16 %v480_v56, %v476_v57  ;;  %1345 = vmatprep.subr.bf16.mxu0 %v1759_v2 }
  0xec   : > { %v485_v62 = vpop.f32.mrf.mxu0  ;;  %v2035_v7 = vpop.f32.mrf.mxu1 }
  0xed   : > { %v627_v1 = vpack.c.bf16 %v482_v60, %v478_v59  ;;  %v658_v6 = vmax.bf16 %v1759_v2, %v626_v61  ;;  %v486_v10 = vadd.f32 %v485_v62, %v1987_v31  ;;  %v1747_v62 = vld [vmem:[%s2454_s5 + $0x58] sm:$0xff]  }
  0xee   : > { %v487_v3 = vpop.f32.mrf.mxu0  ;;  %v2046_v16 = vpop.f32.mrf.mxu1  ;;  %1346 = vmatpush2.bf16.msra.mxu0 %v1747_v62 }
  0xef   : > { %v659_v4 = vmax.bf16 %v1759_v2, %v627_v1  ;;  %v488_v12 = vadd.f32 %v487_v3, %v1993_v34  ;;  %1347 = vmatprep.subr.bf16.mxu0 %v1759_v2 }
  0xf0   : > { %v489_v5 = vpop.f32.mrf.mxu0  ;;  %v2054_v23 = vpop.f32.mrf.mxu1 }
  0xf1   : > { %v490_v9 = vadd.f32 %v489_v5, %v1987_v31  ;;  %1630 = vmatprep.mubr.msk.bf16.mxu1 %vm850_vm3, %v659_v4 }
  0xf2   : > { %v491_v11 = vpop.f32.mrf.mxu0  ;;  %949 = vmatmul.mubr.bf16.gmra.mxu1 %v658_v6  ;;  %v2065_v41 = vpop.f32.mrf.mxu1 }
  0xf3   : > { %v492_v13 = vadd.f32 %v491_v11, %v1993_v34  ;;  %v628_v14 = vpack.c.bf16 %v490_v9, %v486_v10 }
  0xf4   : > { %v495_v15 = vpop.f32.mrf.mxu0  ;;  %v2076_v51 = vpop.f32.mrf.mxu1 }
  0xf5   : > { %v629_v18 = vpack.c.bf16 %v492_v13, %v488_v12  ;;  %v660_v22 = vmax.bf16 %v1759_v2, %v628_v14  ;;  %v496_v29 = vadd.f32 %v495_v15, %v1987_v31 }
  0xf6   : > { %v497_v19 = vpop.f32.mrf.mxu0  ;;  %v2085_v61 = vpop.f32.mrf.mxu1 }
  0xf7   : > { %v661_v20 = vmax.bf16 %v1759_v2, %v629_v18  ;;  %v498_v35 = vadd.f32 %v497_v19, %v1993_v34 }
  0xf8   : > { %v499_v21 = vpop.f32.mrf.mxu0  ;;  %v2093_v6 = vpop.f32.mrf.mxu1 }
  0xf9   : > { %v500_v27 = vadd.f32 %v499_v21, %v1987_v31  ;;  %1631 = vmatprep.mubr.msk.bf16.mxu1 %vm850_vm3, %v661_v20 }
  0xfa   : > { %v501_v32 = vpop.f32.mrf.mxu0  ;;  %959 = vmatmul.mubr.bf16.gmra.mxu1 %v660_v22  ;;  %v2101_v15 = vpop.f32.mrf.mxu1 }
  0xfb   : > { %v502_v37 = vadd.f32 %v501_v32, %v1993_v34  ;;  %v630_v38 = vpack.c.bf16 %v500_v27, %v496_v29 }
  0xfc   : > { %v505_v39 = vpop.f32.mrf.mxu0  ;;  %v2105_v22 = vpop.f32.mrf.mxu1 }
  0xfd   : > { %v631_v43 = vpack.c.bf16 %v502_v37, %v498_v35  ;;  %v662_v49 = vmax.bf16 %v1759_v2, %v630_v38  ;;  %v506_v55 = vadd.f32 %v505_v39, %v1987_v31 }
  0xfe   : > { %v507_v45 = vpop.f32.mrf.mxu0  ;;  %v2112_v39 = vpop.f32.mrf.mxu1 }
  0xff   : > { %v663_v47 = vmax.bf16 %v1759_v2, %v631_v43  ;;  %v508_v57 = vadd.f32 %v507_v45, %v1993_v34  ;;  %v548_v45 = vadd.f32 %v1989_v33, %v1993_v34 }
 0x100   : > { %v509_v48 = vpop.f32.mrf.mxu0 }
 0x101   : > { %v510_v52 = vadd.f32 %v509_v48, %v1987_v31  ;;  %1632 = vmatprep.mubr.msk.bf16.mxu1 %vm850_vm3, %v663_v47  ;;  %v552_v47 = vadd.f32 %v1999_v40, %v1993_v34 }
 0x102   : > { %v511_v56 = vpop.f32.mrf.mxu0  ;;  %969 = vmatmul.mubr.bf16.gmra.mxu1 %v662_v49 }
 0x103   : > { %v512_v58 = vadd.f32 %v511_v56, %v1993_v34  ;;  %v632_v59 = vpack.c.bf16 %v510_v52, %v506_v55  ;;  %v2120_v52 = vpop.f32.mrf.mxu1 }
 0x104   : > { %v515_v60 = vpop.f32.mrf.mxu0 }
 0x105   : > { %v633_v0 = vpack.c.bf16 %v512_v58, %v508_v57  ;;  %v664_v5 = vmax.bf16 %v1759_v2, %v632_v59  ;;  %v516_v9 = vadd.f32 %v515_v60, %v1987_v31  ;;  %v641_v58 = vpack.c.bf16 %v552_v47, %v548_v45  ;;  %v591_v40 = vpop.f32.mrf.mxu1 }
 0x106   : > { %v517_v1 = vpop.f32.mrf.mxu0 }
 0x107   : > { %v665_v3 = vmax.bf16 %v1759_v2, %v633_v0  ;;  %v518_v11 = vadd.f32 %v517_v1, %v1993_v34  ;;  %v673_v0 = vmax.bf16 %v1759_v2, %v641_v58  ;;  %v558_v1 = vadd.f32 %v2012_v50, %v1993_v34 }
 0x108   : > { %v519_v4 = vpop.f32.mrf.mxu0 }
 0x109   : > { %v520_v8 = vadd.f32 %v519_v4, %v1987_v31  ;;  %1633 = vmatprep.mubr.msk.bf16.mxu1 %vm850_vm3, %v665_v3  ;;  %v562_v3 = vadd.f32 %v2027_v63, %v1993_v34  ;;  %v546_v4 = vadd.f32 %v1983_v30, %v1987_v31  ;;  %v568_v30 = vadd.f32 %v2046_v16, %v1993_v34  ;;  %v1748_v16 = vld [vmem:[%s2454_s5 + $0x50] sm:$0xff]  }
 0x10a   : > { %v521_v10 = vpop.f32.mrf.mxu0  ;;  %979 = vmatmul.mubr.bf16.gmra.mxu1 %v664_v5  ;;  %v550_v5 = vadd.f32 %v1995_v36, %v1987_v31  ;;  %v572_v36 = vadd.f32 %v2065_v41, %v1993_v34  ;;  %1348 = vmatpush2.bf16.msra.mxu0 %v1748_v16  ;;  %v582_v41 = vadd.f32 %v2101_v15, %v1993_v34  ;;  %v1750_v15 = vld [vmem:[%s2454_s5 + $0x40] sm:$0xff]  }
 0x10b   : > { %v522_v12 = vadd.f32 %v521_v10, %v1993_v34  ;;  %v634_v13 = vpack.c.bf16 %v520_v8, %v516_v9  ;;  %v2138_v9 = vpop.f32.mrf.mxu1  ;;  %v643_v10 = vpack.c.bf16 %v562_v3, %v558_v1  ;;  %1349 = vmatprep.subr.bf16.mxu0 %v1759_v2  ;;  %v713_v16 = vld [vmem:[%s2453_s4] sm:$0x3] }
 0x10c   : > { %v525_v14 = vpop.f32.mrf.mxu0  ;;  %v640_v50 = vpack.c.bf16 %v550_v5, %v546_v4 }
 0x10d   : > { %v635_v17 = vpack.c.bf16 %v522_v12, %v518_v11  ;;  %v666_v21 = vmax.bf16 %v1759_v2, %v634_v13  ;;  %v526_v27 = vadd.f32 %v525_v14, %v1987_v31  ;;  %v597_v11 = vpop.f32.mrf.mxu1  ;;  %v675_v63 = vmax.bf16 %v1759_v2, %v643_v10 }
 0x10e   : > { %v527_v18 = vpop.f32.mrf.mxu0  ;;  %v556_v12 = vadd.f32 %v2006_v46, %v1987_v31  ;;  %v560_v13 = vadd.f32 %v2016_v54, %v1987_v31  ;;  %v672_v14 = vmax.bf16 %v1759_v2, %v640_v50  ;;  %v578_v54 = vadd.f32 %v2085_v61, %v1993_v34 }
 0x10f   : > { %v667_v19 = vmax.bf16 %v1759_v2, %v635_v17  ;;  %v528_v32 = vadd.f32 %v527_v18, %v1993_v34  ;;  %v599_v17 = vpop.f32.mrf.mxu1  ;;  %v645_v18 = vpack.c.bf16 %v572_v36, %v568_v30 }
 0x110   : > { %v529_v20 = vpop.f32.mrf.mxu0  ;;  %v647_v61 = vpack.c.bf16 %v582_v41, %v578_v54 }
 0x111   : > { %v530_v24 = vadd.f32 %v529_v20, %v1987_v31  ;;  %1634 = vmatprep.mubr.msk.bf16.mxu1 %vm850_vm3, %v667_v19  ;;  %v642_v19 = vpack.c.bf16 %v560_v13, %v556_v12  ;;  %v601_v20 = vpop.f32.mrf.mxu1  ;;  %v677_v46 = vmax.bf16 %v1759_v2, %v645_v18 }
 0x112   : > { %v531_v29 = vpop.f32.mrf.mxu0  ;;  %989 = vmatmul.mubr.bf16.gmra.mxu1 %v666_v21  ;;  %v1749_v21 = vld [vmem:[%s2454_s5 + $0x48] sm:$0xff]  }
 0x113   : > { %v532_v35 = vadd.f32 %v531_v29, %v1993_v34  ;;  %v636_v37 = vpack.c.bf16 %v530_v24, %v526_v27  ;;  %v566_v24 = vadd.f32 %v2035_v7, %v1987_v31  ;;  %v570_v27 = vadd.f32 %v2054_v23, %v1987_v31  ;;  %1350 = vmatpush2.bf16.msra.mxu0 %v1749_v21 }
 0x114   : > { %v535_v38 = vpop.f32.mrf.mxu0  ;;  %v674_v29 = vmax.bf16 %v1759_v2, %v642_v19  ;;  %1351 = vmatprep.subr.bf16.mxu0 %v1759_v2  ;;  %v679_v7 = vmax.bf16 %v1759_v2, %v647_v61  ;;  %v588_v23 = vadd.f32 %v2112_v39, %v1993_v34  ;;  %v598_v39 = vadd.f32 %v597_v11, %v1993_v34 }
 0x115   : > { %v637_v42 = vpack.c.bf16 %v532_v35, %v528_v32  ;;  %v668_v49 = vmax.bf16 %v1759_v2, %v636_v37  ;;  %v536_v55 = vadd.f32 %v535_v38, %v1987_v31  ;;  %v605_v32 = vpop.f32.mrf.mxu1  ;;  %v644_v35 = vpack.c.bf16 %v570_v27, %v566_v24 }
 0x116   : > { %v537_v43 = vpop.f32.mrf.mxu0  ;;  %v592_v38 = vadd.f32 %v591_v40, %v1993_v34  ;;  %v606_v11 = vadd.f32 %v605_v32, %v1987_v31 }
 0x117   : > { %v669_v44 = vmax.bf16 %v1759_v2, %v637_v42  ;;  %v538_v57 = vadd.f32 %v537_v43, %v1993_v34  ;;  %v607_v37 = vpop.f32.mrf.mxu1  ;;  %1352 = vmatpush2.bf16.msra.mxu0 %v1750_v15  ;;  %v576_v42 = vadd.f32 %v2076_v51, %v1987_v31  ;;  %v580_v43 = vadd.f32 %v2093_v6, %v1987_v31 }
 0x118   : > { %v539_v48 = vpop.f32.mrf.mxu0  ;;  %v649_v47 = vpack.c.bf16 %v592_v38, %v588_v23  ;;  %v586_v51 = vadd.f32 %v2105_v22, %v1987_v31  ;;  %v590_v6 = vadd.f32 %v2120_v52, %v1987_v31  ;;  %v596_v22 = vadd.f32 %v2138_v9, %v1987_v31 }
 0x119   : > { %v540_v53 = vadd.f32 %v539_v48, %v1987_v31  ;;  %1635 = vmatprep.mubr.msk.bf16.mxu1 %vm850_vm3, %v669_v44  ;;  %v676_v44 = vmax.bf16 %v1759_v2, %v644_v35  ;;  %v609_v45 = vpop.f32.mrf.mxu1  ;;  %v646_v48 = vpack.c.bf16 %v580_v43, %v576_v42  ;;  %v600_v52 = vadd.f32 %v599_v17, %v1987_v31 }
 0x11a   : > { %v541_v56 = vpop.f32.mrf.mxu0  ;;  %999 = vmatmul.mubr.bf16.gmra.mxu1 %v668_v49  ;;  %v648_v58 = vpack.c.bf16 %v590_v6, %v586_v51  ;;  %v610_v9 = vadd.f32 %v609_v45, %v1987_v31 }
 0x11b   : > { %v542_v33 = vadd.f32 %v541_v56, %v1993_v34  ;;  %v638_v59 = vpack.c.bf16 %v540_v53, %v536_v55  ;;  %v611_v49 = vpop.f32.mrf.mxu1  ;;  %v681_v53 = vmax.bf16 %v1759_v2, %v649_v47  ;;  %v602_v55 = vadd.f32 %v601_v20, %v1993_v34 }
 0x11c   : > { %v678_v56 = vmax.bf16 %v1759_v2, %v646_v48  ;;  %v650_v4 = vpack.c.bf16 %v600_v52, %v596_v22  ;;  %v652_v36 = vpack.c.bf16 %v610_v9, %v606_v11  ;;  %v2220_v20 = vrot.slane %v713_v16, %v340_v26 }
 0x11d   : > { %v639_v60 = vpack.c.bf16 %v542_v33, %v538_v57  ;;  %v670_v8 = vmax.bf16 %v1759_v2, %v638_v59  ;;  %v615_v57 = vpop.f32.mrf.mxu1  ;;  %v651_v33 = vpack.c.bf16 %v602_v55, %v598_v39 }
 0x11e   : > { %v616_v13 = vadd.f32 %v615_v57, %v1987_v31  ;;  %v684_v17 = vmax.bf16 %v1759_v2, %v652_v36 }
 0x11f   : > { %v671_v62 = vmax.bf16 %v1759_v2, %v639_v60  ;;  %v617_v59 = vpop.f32.mrf.mxu1  ;;  %v683_v40 = vmax.bf16 %v1759_v2, %v651_v33  ;;  %v608_v60 = vadd.f32 %v607_v37, %v1993_v34 }
 0x120   : > { %v618_v10 = vadd.f32 %v617_v59, %v1993_v34 }
 0x121   : > { %1636 = vmatprep.mubr.msk.bf16.mxu1 %vm850_vm3, %v671_v62  ;;  %v612_v62 = vadd.f32 %v611_v49, %v1993_v34  ;;  %v619_v1 = vpop.f32.mrf.mxu1 }
 0x122   : > { %1009 = vmatmul.mubr.bf16.gmra.mxu1 %v670_v8 }
 0x123   : > { %1637 = vmatprep.mubr.msk.bf16.mxu1 %vm850_vm3, %v673_v0  ;;  %v680_v0 = vmax.bf16 %v1759_v2, %v648_v58  ;;  %v653_v3 = vpack.c.bf16 %v612_v62, %v608_v60  ;;  %v621_v5 = vpop.f32.mrf.mxu1 }
 0x124   : > { %v622_v50 = vadd.f32 %v621_v5, %v1993_v34 }
 0x125   : > { %v685_v8 = vmax.bf16 %v1759_v2, %v653_v3 }
 0x126   : > { %v655_v30 = vpack.c.bf16 %v622_v50, %v618_v10 }
 0x128   : > { %v687_v12 = vmax.bf16 %v1759_v2, %v655_v30 }
 0x12a   : > { %1019 = vmatmul.mubr.bf16.gmra.mxu1 %v672_v14  ;;  %v620_v14 = vadd.f32 %v619_v1, %v1987_v31  ;;  %v2224_v31 = vrot.slane %v713_v16, %v344_v28 }
 0x12b   : > { %1638 = vmatprep.mubr.msk.bf16.mxu1 %vm850_vm3, %v675_v63  ;;  %v682_v63 = vmax.bf16 %v1759_v2, %v650_v4 }
 0x12c   : > { %v654_v34 = vpack.c.bf16 %v620_v14, %v616_v13 }
 0x12e   : > { %v686_v18 = vmax.bf16 %v1759_v2, %v654_v34 }
 0x132   : > { %1029 = vmatmul.mubr.bf16.gmra.mxu1 %v674_v29 }
 0x133   : > { %1639 = vmatprep.mubr.msk.bf16.mxu1 %vm850_vm3, %v677_v46 }
 0x13a   : > { %1039 = vmatmul.mubr.bf16.gmra.mxu1 %v676_v44 }
 0x13b   : > { %1640 = vmatprep.mubr.msk.bf16.mxu1 %vm850_vm3, %v679_v7 }
 0x142   : > { %1049 = vmatmul.mubr.bf16.gmra.mxu1 %v678_v56 }
 0x143   : > { %1641 = vmatprep.mubr.msk.bf16.mxu1 %vm850_vm3, %v681_v53 }
 0x14a   : > { %1059 = vmatmul.mubr.bf16.gmra.mxu1 %v680_v0 }
 0x14b   : > { %1642 = vmatprep.mubr.msk.bf16.mxu1 %vm850_vm3, %v683_v40 }
 0x152   : > { %1069 = vmatmul.mubr.bf16.gmra.mxu1 %v682_v63 }
 0x153   : > { %1643 = vmatprep.mubr.msk.bf16.mxu1 %vm850_vm3, %v685_v8 }
 0x15a   : > { %1079 = vmatmul.mubr.bf16.gmra.mxu1 %v684_v17 }
 0x15b   : > { %1644 = vmatprep.mubr.msk.bf16.mxu1 %vm850_vm3, %v687_v12 }
 0x162   : > { %1089 = vmatmul.mubr.bf16.gmra.mxu1 %v686_v18 }
 0x1aa   : > { %v940_v19 = vpop.f32.mrf.mxu1 }
 0x1ab   : > { %v941_v21 = vadd.f32 %v940_v19, %v2220_v20 }
 0x1ac   : > { %v942_v46 = vpop.f32.mrf.mxu1 }
 0x1ad   : > { %v943_v27 = vadd.f32 %v942_v46, %v2224_v31 }
 0x1ae   : > { %v944_v54 = vpop.f32.mrf.mxu1 }
 0x1af   : > { %v945_v41 = vadd.f32 %v944_v54, %v2220_v20 }
 0x1b0   : > { %v946_v24 = vpop.f32.mrf.mxu1 }
 0x1b1   : > { %v947_v29 = vadd.f32 %v946_v24, %v2224_v31  ;;  %v1099_v32 = vpack.c.bf16 %v945_v41, %v941_v21 }
 0x1b2   : > { %v950_v61 = vpop.f32.mrf.mxu1 }
 0x1b3   : > { %v1100_v15 = vpack.c.bf16 %v947_v29, %v943_v27  ;;  %v1131_v25 = vmax.bf16 %v1759_v2, %v1099_v32  ;;  %v951_v7 = vadd.f32 %v950_v61, %v2220_v20 }
 0x1b4   : > { %v952_v26 = vpop.f32.mrf.mxu1 }
 0x1b5   : > { %v1132_v35 = vmax.bf16 %v1759_v2, %v1100_v15  ;;  %v953_v38 = vadd.f32 %v952_v26, %v2224_v31 }
 0x1b6   : > { %v954_v28 = vpop.f32.mrf.mxu1 }
 0x1b7   : > { %v955_v37 = vadd.f32 %v954_v28, %v2220_v20  ;;  %1659 = vmatprep.mubr.msk.bf16.mxu0 %vm850_vm3, %v1132_v35 }
 0x1b8   : > { %v956_v23 = vpop.f32.mrf.mxu1  ;;  %1354 = vmatmul.mubr.bf16.vlgmr.msra.gmra.mxu0 %v1131_v25 }
 0x1b9   : > { %v957_v42 = vadd.f32 %v956_v23, %v2224_v31  ;;  %v1101_v43 = vpack.c.bf16 %v955_v37, %v951_v7 }
 0x1ba   : > { %v960_v44 = vpop.f32.mrf.mxu1 }
 0x1bb   : > { %v1102_v45 = vpack.c.bf16 %v957_v42, %v953_v38  ;;  %v1133_v53 = vmax.bf16 %v1759_v2, %v1101_v43  ;;  %v961_v55 = vadd.f32 %v960_v44, %v2220_v20 }
 0x1bc   : > { %v962_v47 = vpop.f32.mrf.mxu1 }
 0x1bd   : > { %v1134_v48 = vmax.bf16 %v1759_v2, %v1102_v45  ;;  %v963_v6 = vadd.f32 %v962_v47, %v2224_v31 }
 0x1be   : > { %v964_v49 = vpop.f32.mrf.mxu1 }
 0x1bf   : > { %v965_v39 = vadd.f32 %v964_v49, %v2220_v20  ;;  %1660 = vmatprep.mubr.msk.bf16.mxu0 %vm850_vm3, %v1134_v48 }
 0x1c0   : > { %v966_v51 = vpop.f32.mrf.mxu1  ;;  %1362 = vmatmul.mubr.bf16.gmra.mxu0 %v1133_v53 }
 0x1c1   : > { %v967_v56 = vadd.f32 %v966_v51, %v2224_v31  ;;  %v1103_v57 = vpack.c.bf16 %v965_v39, %v961_v55 }
 0x1c2   : > { %v970_v33 = vpop.f32.mrf.mxu1 }
 0x1c3   : > { %v1104_v58 = vpack.c.bf16 %v967_v56, %v963_v6  ;;  %v1135_v62 = vmax.bf16 %v1759_v2, %v1103_v57  ;;  %v971_v52 = vadd.f32 %v970_v33, %v2220_v20 }
 0x1c4   : > { %v972_v59 = vpop.f32.mrf.mxu1 }
 0x1c5   : > { %v1136_v40 = vmax.bf16 %v1759_v2, %v1104_v58  ;;  %v973_v1 = vadd.f32 %v972_v59, %v2224_v31 }
 0x1c6   : > { %v974_v60 = vpop.f32.mrf.mxu1 }
 0x1c7   : > { %v975_v22 = vadd.f32 %v974_v60, %v2220_v20  ;;  %1661 = vmatprep.mubr.msk.bf16.mxu0 %vm850_vm3, %v1136_v40 }
 0x1c8   : > { %v976_v0 = vpop.f32.mrf.mxu1  ;;  %1370 = vmatmul.mubr.bf16.gmra.mxu0 %v1135_v62 }
 0x1c9   : > { %v977_v3 = vadd.f32 %v976_v0, %v2224_v31  ;;  %v1105_v4 = vpack.c.bf16 %v975_v22, %v971_v52 }
 0x1ca   : > { %v980_v5 = vpop.f32.mrf.mxu1 }
 0x1cb   : > { %v1106_v8 = vpack.c.bf16 %v977_v3, %v973_v1  ;;  %v1137_v9 = vmax.bf16 %v1759_v2, %v1105_v4  ;;  %v981_v30 = vadd.f32 %v980_v5, %v2220_v20 }
 0x1cc   : > { %v982_v10 = vpop.f32.mrf.mxu1 }
 0x1cd   : > { %v1138_v50 = vmax.bf16 %v1759_v2, %v1106_v8  ;;  %v983_v12 = vadd.f32 %v982_v10, %v2224_v31 }
 0x1ce   : > { %v984_v11 = vpop.f32.mrf.mxu1 }
 0x1cf   : > { %v985_v63 = vadd.f32 %v984_v11, %v2220_v20  ;;  %1662 = vmatprep.mubr.msk.bf16.mxu0 %vm850_vm3, %v1138_v50 }
 0x1d0   : > { %v986_v36 = vpop.f32.mrf.mxu1  ;;  %1378 = vmatmul.mubr.bf16.gmra.mxu0 %v1137_v9 }
 0x1d1   : > { %v987_v13 = vadd.f32 %v986_v36, %v2224_v31  ;;  %v1107_v14 = vpack.c.bf16 %v985_v63, %v981_v30 }
 0x1d2   : > { %v990_v17 = vpop.f32.mrf.mxu1 }
 0x1d3   : > { %v1108_v34 = vpack.c.bf16 %v987_v13, %v983_v12  ;;  %v1139_v46 = vmax.bf16 %v1759_v2, %v1107_v14  ;;  %v991_v41 = vadd.f32 %v990_v17, %v2220_v20 }
 0x1d4   : > { %v992_v18 = vpop.f32.mrf.mxu1 }
 0x1d5   : > { %v1140_v16 = vmax.bf16 %v1759_v2, %v1108_v34  ;;  %v993_v24 = vadd.f32 %v992_v18, %v2224_v31 }
 0x1d6   : > { %v994_v19 = vpop.f32.mrf.mxu1 }
 0x1d7   : > { %v995_v54 = vadd.f32 %v994_v19, %v2220_v20  ;;  %1663 = vmatprep.mubr.msk.bf16.mxu0 %vm850_vm3, %v1140_v16 }
 0x1d8   : > { %v996_v21 = vpop.f32.mrf.mxu1  ;;  %1386 = vmatmul.mubr.bf16.gmra.mxu0 %v1139_v46 }
 0x1d9   : > { %v997_v27 = vadd.f32 %v996_v21, %v2224_v31  ;;  %v1109_v29 = vpack.c.bf16 %v995_v54, %v991_v41 }
 0x1da   : > { %v1000_v32 = vpop.f32.mrf.mxu1 }
 0x1db   : > { %v1110_v61 = vpack.c.bf16 %v997_v27, %v993_v24  ;;  %v1141_v25 = vmax.bf16 %v1759_v2, %v1109_v29  ;;  %v1001_v37 = vadd.f32 %v1000_v32, %v2220_v20 }
 0x1dc   : > { %v1002_v15 = vpop.f32.mrf.mxu1 }
 0x1dd   : > { %v1142_v26 = vmax.bf16 %v1759_v2, %v1110_v61  ;;  %v1003_v23 = vadd.f32 %v1002_v15, %v2224_v31 }
 0x1de   : > { %v1004_v35 = vpop.f32.mrf.mxu1 }
 0x1df   : > { %v1005_v28 = vadd.f32 %v1004_v35, %v2220_v20  ;;  %1664 = vmatprep.mubr.msk.bf16.mxu0 %vm850_vm3, %v1142_v26 }
 0x1e0   : > { %v1006_v7 = vpop.f32.mrf.mxu1  ;;  %1394 = vmatmul.mubr.bf16.gmra.mxu0 %v1141_v25 }
 0x1e1   : > { %v1007_v38 = vadd.f32 %v1006_v7, %v2224_v31  ;;  %v1111_v42 = vpack.c.bf16 %v1005_v28, %v1001_v37 }
 0x1e2   : > { %v1010_v43 = vpop.f32.mrf.mxu1 }
 0x1e3   : > { %v1112_v44 = vpack.c.bf16 %v1007_v38, %v1003_v23  ;;  %v1143_v49 = vmax.bf16 %v1759_v2, %v1111_v42  ;;  %v1011_v39 = vadd.f32 %v1010_v43, %v2220_v20 }
 0x1e4   : > { %v1012_v45 = vpop.f32.mrf.mxu1 }
 0x1e5   : > { %v1144_v47 = vmax.bf16 %v1759_v2, %v1112_v44  ;;  %v1013_v51 = vadd.f32 %v1012_v45, %v2224_v31 }
 0x1e6   : > { %v1014_v48 = vpop.f32.mrf.mxu1 }
 0x1e7   : > { %v1015_v53 = vadd.f32 %v1014_v48, %v2220_v20  ;;  %1665 = vmatprep.mubr.msk.bf16.mxu0 %vm850_vm3, %v1144_v47 }
 0x1e8   : > { %v1016_v55 = vpop.f32.mrf.mxu1  ;;  %1402 = vmatmul.mubr.bf16.gmra.mxu0 %v1143_v49 }
 0x1e9   : > { %v1017_v6 = vadd.f32 %v1016_v55, %v2224_v31  ;;  %v1113_v56 = vpack.c.bf16 %v1015_v53, %v1011_v39 }
 0x1ea   : > { %v1020_v57 = vpop.f32.mrf.mxu1 }
 0x1eb   : > { %v1114_v33 = vpack.c.bf16 %v1017_v6, %v1013_v51  ;;  %v1145_v60 = vmax.bf16 %v1759_v2, %v1113_v56  ;;  %v1021_v22 = vadd.f32 %v1020_v57, %v2220_v20 }
 0x1ec   : > { %v1022_v58 = vpop.f32.mrf.mxu1 }
 0x1ed   : > { %v1146_v59 = vmax.bf16 %v1759_v2, %v1114_v33  ;;  %v1023_v0 = vadd.f32 %v1022_v58, %v2224_v31 }
 0x1ee   : > { %v1024_v40 = vpop.f32.mrf.mxu1 }
 0x1ef   : > { %v1025_v62 = vadd.f32 %v1024_v40, %v2220_v20  ;;  %1666 = vmatprep.mubr.msk.bf16.mxu0 %vm850_vm3, %v1146_v59 }
 0x1f0   : > { %v1026_v52 = vpop.f32.mrf.mxu1  ;;  %1410 = vmatmul.mubr.bf16.gmra.mxu0 %v1145_v60 }
 0x1f1   : > { %v1027_v1 = vadd.f32 %v1026_v52, %v2224_v31  ;;  %v1115_v3 = vpack.c.bf16 %v1025_v62, %v1021_v22 }
 0x1f2   : > { %v1030_v4 = vpop.f32.mrf.mxu1 }
 0x1f3   : > { %v1116_v5 = vpack.c.bf16 %v1027_v1, %v1023_v0  ;;  %v1147_v11 = vmax.bf16 %v1759_v2, %v1115_v3  ;;  %v1031_v63 = vadd.f32 %v1030_v4, %v2220_v20 }
 0x1f4   : > { %v1032_v8 = vpop.f32.mrf.mxu1 }
 0x1f5   : > { %v1148_v10 = vmax.bf16 %v1759_v2, %v1116_v5  ;;  %v1033_v36 = vadd.f32 %v1032_v8, %v2224_v31 }
 0x1f6   : > { %v1034_v50 = vpop.f32.mrf.mxu1 }
 0x1f7   : > { %v1035_v9 = vadd.f32 %v1034_v50, %v2220_v20  ;;  %1667 = vmatprep.mubr.msk.bf16.mxu0 %vm850_vm3, %v1148_v10 }
 0x1f8   : > { %v1036_v30 = vpop.f32.mrf.mxu1  ;;  %1418 = vmatmul.mubr.bf16.gmra.mxu0 %v1147_v11 }
 0x1f9   : > { %v1037_v12 = vadd.f32 %v1036_v30, %v2224_v31  ;;  %v1117_v13 = vpack.c.bf16 %v1035_v9, %v1031_v63 }
 0x1fa   : > { %v1040_v14 = vpop.f32.mrf.mxu1 }
 0x1fb   : > { %v1118_v17 = vpack.c.bf16 %v1037_v12, %v1033_v36  ;;  %v1149_v19 = vmax.bf16 %v1759_v2, %v1117_v13  ;;  %v1041_v54 = vadd.f32 %v1040_v14, %v2220_v20 }
 0x1fc   : > { %v1042_v34 = vpop.f32.mrf.mxu1 }
 0x1fd   : > { %v1150_v18 = vmax.bf16 %v1759_v2, %v1118_v17  ;;  %v1043_v21 = vadd.f32 %v1042_v34, %v2224_v31 }
 0x1fe   : > { %v1044_v16 = vpop.f32.mrf.mxu1 }
 0x1ff   : > { %v1045_v46 = vadd.f32 %v1044_v16, %v2220_v20  ;;  %1668 = vmatprep.mubr.msk.bf16.mxu0 %vm850_vm3, %v1150_v18 }
 0x200   : > { %v1046_v41 = vpop.f32.mrf.mxu1  ;;  %1426 = vmatmul.mubr.bf16.gmra.mxu0 %v1149_v19 }
 0x201   : > { %v1047_v24 = vadd.f32 %v1046_v41, %v2224_v31  ;;  %v1119_v27 = vpack.c.bf16 %v1045_v46, %v1041_v54 }
 0x202   : > { %v1050_v29 = vpop.f32.mrf.mxu1 }
 0x203   : > { %v1120_v32 = vpack.c.bf16 %v1047_v24, %v1043_v21  ;;  %v1151_v35 = vmax.bf16 %v1759_v2, %v1119_v27  ;;  %v1051_v28 = vadd.f32 %v1050_v29, %v2220_v20 }
 0x204   : > { %v1052_v61 = vpop.f32.mrf.mxu1 }
 0x205   : > { %v1152_v15 = vmax.bf16 %v1759_v2, %v1120_v32  ;;  %v1053_v7 = vadd.f32 %v1052_v61, %v2224_v31  ;;  %v2341_v61 = vld [vmem:[%s2455_s6] ss:$0 sm:$0xff] }
 0x206   : > { %v1054_v26 = vpop.f32.mrf.mxu1 }
 0x207   : > { %v1055_v25 = vadd.f32 %v1054_v26, %v2220_v20  ;;  %1669 = vmatprep.mubr.msk.bf16.mxu0 %vm850_vm3, %v1152_v15 }
 0x208   : > { %v1056_v37 = vpop.f32.mrf.mxu1  ;;  %1434 = vmatmul.mubr.bf16.gmra.mxu0 %v1151_v35 }
 0x209   : > { %v1057_v23 = vadd.f32 %v1056_v37, %v2224_v31  ;;  %v1121_v38 = vpack.c.bf16 %v1055_v25, %v1051_v28 }
 0x20a   : > { %v1060_v42 = vpop.f32.mrf.mxu1 }
 0x20b   : > { %v1122_v43 = vpack.c.bf16 %v1057_v23, %v1053_v7  ;;  %v1153_v48 = vmax.bf16 %v1759_v2, %v1121_v38  ;;  %v1061_v53 = vadd.f32 %v1060_v42, %v2220_v20 }
 0x20c   : > { %v1062_v44 = vpop.f32.mrf.mxu1 }
 0x20d   : > { %v1154_v45 = vmax.bf16 %v1759_v2, %v1122_v43  ;;  %v1063_v55 = vadd.f32 %v1062_v44, %v2224_v31 }
 0x20e   : > { %v1064_v47 = vpop.f32.mrf.mxu1 }
 0x20f   : > { %v1065_v49 = vadd.f32 %v1064_v47, %v2220_v20  ;;  %1670 = vmatprep.mubr.msk.bf16.mxu0 %vm850_vm3, %v1154_v45 }
 0x210   : > { %v1066_v39 = vpop.f32.mrf.mxu1  ;;  %1442 = vmatmul.mubr.bf16.gmra.mxu0 %v1153_v48 }
 0x211   : > { %v1067_v51 = vadd.f32 %v1066_v39, %v2224_v31  ;;  %v1123_v6 = vpack.c.bf16 %v1065_v49, %v1061_v53 }
 0x212   : > { %v1070_v56 = vpop.f32.mrf.mxu1 }
 0x213   : > { %v1124_v57 = vpack.c.bf16 %v1067_v51, %v1063_v55  ;;  %v1155_v40 = vmax.bf16 %v1759_v2, %v1123_v6  ;;  %v1071_v62 = vadd.f32 %v1070_v56, %v2220_v20 }
 0x214   : > { %v1072_v33 = vpop.f32.mrf.mxu1 }
 0x215   : > { %v1156_v58 = vmax.bf16 %v1759_v2, %v1124_v57  ;;  %v1073_v52 = vadd.f32 %v1072_v33, %v2224_v31 }
 0x216   : > { %v1074_v59 = vpop.f32.mrf.mxu1 }
 0x217   : > { %v1075_v60 = vadd.f32 %v1074_v59, %v2220_v20  ;;  %1671 = vmatprep.mubr.msk.bf16.mxu0 %vm850_vm3, %v1156_v58 }
 0x218   : > { %v1076_v22 = vpop.f32.mrf.mxu1  ;;  %1450 = vmatmul.mubr.bf16.gmra.mxu0 %v1155_v40 }
 0x219   : > { %v1077_v0 = vadd.f32 %v1076_v22, %v2224_v31  ;;  %v1125_v1 = vpack.c.bf16 %v1075_v60, %v1071_v62 }
 0x21a   : > { %v1080_v3 = vpop.f32.mrf.mxu1 }
 0x21b   : > { %v1126_v4 = vpack.c.bf16 %v1077_v0, %v1073_v52  ;;  %v1157_v50 = vmax.bf16 %v1759_v2, %v1125_v1  ;;  %v1081_v9 = vadd.f32 %v1080_v3, %v2220_v20 }
 0x21c   : > { %v1082_v5 = vpop.f32.mrf.mxu1 }
 0x21d   : > { %v1158_v8 = vmax.bf16 %v1759_v2, %v1126_v4  ;;  %v1083_v30 = vadd.f32 %v1082_v5, %v2224_v31 }
 0x21e   : > { %v1084_v10 = vpop.f32.mrf.mxu1 }
 0x21f   : > { %v1085_v11 = vadd.f32 %v1084_v10, %v2220_v20  ;;  %1672 = vmatprep.mubr.msk.bf16.mxu0 %vm850_vm3, %v1158_v8 }
 0x220   : > { %v1086_v63 = vpop.f32.mrf.mxu1  ;;  %1458 = vmatmul.mubr.bf16.gmra.mxu0 %v1157_v50 }
 0x221   : > { %v1087_v36 = vadd.f32 %v1086_v63, %v2224_v31  ;;  %v1127_v12 = vpack.c.bf16 %v1085_v11, %v1081_v9 }
 0x222   : > { %v1090_v13 = vpop.f32.mrf.mxu1 }
 0x223   : > { %v1128_v14 = vpack.c.bf16 %v1087_v36, %v1083_v30  ;;  %v1159_v16 = vmax.bf16 %v1759_v2, %v1127_v12  ;;  %v1091_v46 = vadd.f32 %v1090_v13, %v2220_v20 }
 0x224   : > { %v1092_v17 = vpop.f32.mrf.mxu1 }
 0x225   : > { %v1160_v34 = vmax.bf16 %v1759_v2, %v1128_v14  ;;  %v1093_v41 = vadd.f32 %v1092_v17, %v2224_v31 }
 0x226   : > { %v1094_v18 = vpop.f32.mrf.mxu1 }
 0x227   : > { %v1095_v19 = vadd.f32 %v1094_v18, %v2220_v20  ;;  %1673 = vmatprep.mubr.msk.bf16.mxu0 %vm850_vm3, %v1160_v34 }
 0x228   : > { %v1096_v54 = vpop.f32.mrf.mxu1  ;;  %1466 = vmatmul.mubr.bf16.gmra.mxu0 %v1159_v16 }
 0x229   : > { %v1097_v21 = vadd.f32 %v1096_v54, %v2224_v31  ;;  %v1129_v24 = vpack.c.bf16 %v1095_v19, %v1091_v46 }
 0x22b   : > { %v1130_v27 = vpack.c.bf16 %v1097_v21, %v1093_v41  ;;  %v1161_v32 = vmax.bf16 %v1759_v2, %v1129_v24 }
 0x22d   : > { %v1162_v29 = vmax.bf16 %v1759_v2, %v1130_v27 }
 0x22f   : > { %1674 = vmatprep.mubr.msk.bf16.mxu0 %vm850_vm3, %v1162_v29 }
 0x230   : > { %1474 = vmatmul.mubr.bf16.gmra.mxu0 %v1161_v32 }
 0x278   : > { %v1355_v20 = vpop.f32.mrf.mxu0 }
 0x279   : > { %v1356_v2 = vadd.f32 %v2341_v61, %v1355_v20 }
 0x27a   : > { %v1357_v31 = vpop.f32.mrf.mxu0 }
 0x27b   : > { %1483 = vst.msk [vmem:[%s2348_s25] sm:$0xff] %vm1482_vm4, %v1356_v2 }
 0x27c   : > { %v1358_v15 = vpop.f32.mrf.mxu0 }
 0x27d   : > { %v1359_v26 = vadd.f32 %v2341_v61, %v1358_v15 }
 0x27e   : > { %v1360_v35 = vpop.f32.mrf.mxu0 }
 0x27f   : > { %1484 = vst.msk [vmem:[%s2348_s25 + $0x8] sm:$0xff] %vm1482_vm4, %v1359_v26 }
 0x280   : > { %v1363_v25 = vpop.f32.mrf.mxu0 }
 0x281   : > { %v1364_v28 = vadd.f32 %v2341_v61, %v1363_v25 }
 0x282   : > { %v1365_v37 = vpop.f32.mrf.mxu0 }
 0x283   : > { %1485 = vst.msk [vmem:[%s2348_s25 + $0x10] sm:$0xff] %vm1482_vm4, %v1364_v28 }
 0x284   : > { %v1366_v7 = vpop.f32.mrf.mxu0 }
 0x285   : > { %v1367_v23 = vadd.f32 %v2341_v61, %v1366_v7 }
 0x286   : > { %v1368_v38 = vpop.f32.mrf.mxu0 }
 0x287   : > { %1486 = vst.msk [vmem:[%s2348_s25 + $0x18] sm:$0xff] %vm1482_vm4, %v1367_v23 }
 0x288   : > { %v1371_v42 = vpop.f32.mrf.mxu0 }
 0x289   : > { %v1372_v43 = vadd.f32 %v2341_v61, %v1371_v42 }
 0x28a   : > { %v1373_v44 = vpop.f32.mrf.mxu0 }
 0x28b   : > { %1487 = vst.msk [vmem:[%s2348_s25 + $0x20] sm:$0xff] %vm1482_vm4, %v1372_v43 }
 0x28c   : > { %v1374_v45 = vpop.f32.mrf.mxu0 }
 0x28d   : > { %v1375_v47 = vadd.f32 %v2341_v61, %v1374_v45 }
 0x28e   : > { %v1376_v48 = vpop.f32.mrf.mxu0 }
 0x28f   : > { %1488 = vst.msk [vmem:[%s2348_s25 + $0x28] sm:$0xff] %vm1482_vm4, %v1375_v47 }
 0x290   : > { %v1379_v49 = vpop.f32.mrf.mxu0 }
 0x291   : > { %v1380_v53 = vadd.f32 %v2341_v61, %v1379_v49 }
 0x292   : > { %v1381_v39 = vpop.f32.mrf.mxu0 }
 0x293   : > { %1489 = vst.msk [vmem:[%s2348_s25 + $0x30] sm:$0xff] %vm1482_vm4, %v1380_v53 }
 0x294   : > { %v1382_v55 = vpop.f32.mrf.mxu0 }
 0x295   : > { %v1383_v51 = vadd.f32 %v2341_v61, %v1382_v55 }
 0x296   : > { %v1384_v6 = vpop.f32.mrf.mxu0 }
 0x297   : > { %1490 = vst.msk [vmem:[%s2348_s25 + $0x38] sm:$0xff] %vm1482_vm4, %v1383_v51 }
 0x298   : > { %v1387_v56 = vpop.f32.mrf.mxu0 }
 0x299   : > { %v1388_v57 = vadd.f32 %v2341_v61, %v1387_v56 }
 0x29a   : > { %v1389_v33 = vpop.f32.mrf.mxu0 }
 0x29b   : > { %1491 = vst.msk [vmem:[%s2348_s25 + $0x40] sm:$0xff] %vm1482_vm4, %v1388_v57 }
 0x29c   : > { %v1390_v58 = vpop.f32.mrf.mxu0 }
 0x29d   : > { %v1391_v59 = vadd.f32 %v2341_v61, %v1390_v58 }
 0x29e   : > { %v1392_v40 = vpop.f32.mrf.mxu0 }
 0x29f   : > { %1492 = vst.msk [vmem:[%s2348_s25 + $0x48] sm:$0xff] %vm1482_vm4, %v1391_v59 }
 0x2a0   : > { %v1395_v60 = vpop.f32.mrf.mxu0 }
 0x2a1   : > { %v1396_v62 = vadd.f32 %v2341_v61, %v1395_v60 }
 0x2a2   : > { %v1397_v22 = vpop.f32.mrf.mxu0 }
 0x2a3   : > { %1493 = vst.msk [vmem:[%s2348_s25 + $0x50] sm:$0xff] %vm1482_vm4, %v1396_v62 }
 0x2a4   : > { %v1398_v52 = vpop.f32.mrf.mxu0 }
 0x2a5   : > { %v1399_v0 = vadd.f32 %v2341_v61, %v1398_v52 }
 0x2a6   : > { %v1400_v1 = vpop.f32.mrf.mxu0 }
 0x2a7   : > { %1494 = vst.msk [vmem:[%s2348_s25 + $0x58] sm:$0xff] %vm1482_vm4, %v1399_v0 }
 0x2a8   : > { %v1403_v3 = vpop.f32.mrf.mxu0 }
 0x2a9   : > { %v1404_v4 = vadd.f32 %v2341_v61, %v1403_v3 }
 0x2aa   : > { %v1405_v5 = vpop.f32.mrf.mxu0 }
 0x2ab   : > { %1495 = vst.msk [vmem:[%s2348_s25 + $0x60] sm:$0xff] %vm1482_vm4, %v1404_v4 }
 0x2ac   : > { %v1406_v8 = vpop.f32.mrf.mxu0 }
 0x2ad   : > { %v1407_v10 = vadd.f32 %v2341_v61, %v1406_v8 }
 0x2ae   : > { %v1408_v50 = vpop.f32.mrf.mxu0 }
 0x2af   : > { %1496 = vst.msk [vmem:[%s2348_s25 + $0x68] sm:$0xff] %vm1482_vm4, %v1407_v10 }
 0x2b0   : > { %v1411_v11 = vpop.f32.mrf.mxu0 }
 0x2b1   : > { %v1412_v9 = vadd.f32 %v2341_v61, %v1411_v11 }
 0x2b2   : > { %v1413_v63 = vpop.f32.mrf.mxu0 }
 0x2b3   : > { %1497 = vst.msk [vmem:[%s2348_s25 + $0x70] sm:$0xff] %vm1482_vm4, %v1412_v9 }
 0x2b4   : > { %v1414_v30 = vpop.f32.mrf.mxu0 }
 0x2b5   : > { %v1415_v36 = vadd.f32 %v2341_v61, %v1414_v30 }
 0x2b6   : > { %v1416_v12 = vpop.f32.mrf.mxu0 }
 0x2b7   : > { %1498 = vst.msk [vmem:[%s2348_s25 + $0x78] sm:$0xff] %vm1482_vm4, %v1415_v36 }
 0x2b8   : > { %v1419_v13 = vpop.f32.mrf.mxu0 }
 0x2b9   : > { %v1420_v14 = vadd.f32 %v2341_v61, %v1419_v13 }
 0x2ba   : > { %v1421_v17 = vpop.f32.mrf.mxu0 }
 0x2bb   : > { %1499 = vst.msk [vmem:[%s2348_s25 + $0x80] sm:$0xff] %vm1482_vm4, %v1420_v14 }
 0x2bc   : > { %v1422_v34 = vpop.f32.mrf.mxu0 }
 0x2bd   : > { %v1423_v18 = vadd.f32 %v2341_v61, %v1422_v34 }
 0x2be   : > { %v1424_v16 = vpop.f32.mrf.mxu0 }
 0x2bf   : > { %1500 = vst.msk [vmem:[%s2348_s25 + $0x88] sm:$0xff] %vm1482_vm4, %v1423_v18 }
 0x2c0   : > { %v1427_v19 = vpop.f32.mrf.mxu0 }
 0x2c1   : > { %v1428_v46 = vadd.f32 %v2341_v61, %v1427_v19 }
 0x2c2   : > { %v1429_v54 = vpop.f32.mrf.mxu0 }
 0x2c3   : > { %1501 = vst.msk [vmem:[%s2348_s25 + $0x90] sm:$0xff] %vm1482_vm4, %v1428_v46 }
 0x2c4   : > { %v1430_v41 = vpop.f32.mrf.mxu0 }
 0x2c5   : > { %v1431_v21 = vadd.f32 %v2341_v61, %v1430_v41 }
 0x2c6   : > { %v1432_v24 = vpop.f32.mrf.mxu0 }
 0x2c7   : > { %1502 = vst.msk [vmem:[%s2348_s25 + $0x98] sm:$0xff] %vm1482_vm4, %v1431_v21 }
 0x2c8   : > { %v1435_v27 = vpop.f32.mrf.mxu0 }
 0x2c9   : > { %v1436_v29 = vadd.f32 %v2341_v61, %v1435_v27 }
 0x2ca   : > { %v1437_v32 = vpop.f32.mrf.mxu0 }
 0x2cb   : > { %1503 = vst.msk [vmem:[%s2348_s25 + $0xa0] sm:$0xff] %vm1482_vm4, %v1436_v29 }
 0x2cc   : > { %v1438_v20 = vpop.f32.mrf.mxu0 }
 0x2cd   : > { %v1439_v2 = vadd.f32 %v2341_v61, %v1438_v20 }
 0x2ce   : > { %v1440_v31 = vpop.f32.mrf.mxu0 }
 0x2cf   : > { %1504 = vst.msk [vmem:[%s2348_s25 + $0xa8] sm:$0xff] %vm1482_vm4, %v1439_v2 }
 0x2d0   : > { %v1443_v15 = vpop.f32.mrf.mxu0 }
 0x2d1   : > { %v1444_v26 = vadd.f32 %v2341_v61, %v1443_v15 }
 0x2d2   : > { %v1445_v35 = vpop.f32.mrf.mxu0 }
 0x2d3   : > { %1505 = vst.msk [vmem:[%s2348_s25 + $0xb0] sm:$0xff] %vm1482_vm4, %v1444_v26 }
 0x2d4   : > { %v1446_v25 = vpop.f32.mrf.mxu0 }
 0x2d5   : > { %v1447_v28 = vadd.f32 %v2341_v61, %v1446_v25 }
 0x2d6   : > { %v1448_v37 = vpop.f32.mrf.mxu0 }
 0x2d7   : > { %1506 = vst.msk [vmem:[%s2348_s25 + $0xb8] sm:$0xff] %vm1482_vm4, %v1447_v28 }
 0x2d8   : > { %v1451_v7 = vpop.f32.mrf.mxu0 }
 0x2d9   : > { %v1452_v23 = vadd.f32 %v2341_v61, %v1451_v7 }
 0x2da   : > { %v1453_v38 = vpop.f32.mrf.mxu0 }
 0x2db   : > { %1507 = vst.msk [vmem:[%s2348_s25 + $0xc0] sm:$0xff] %vm1482_vm4, %v1452_v23 }
 0x2dc   : > { %v1454_v42 = vpop.f32.mrf.mxu0 }
 0x2dd   : > { %v1455_v43 = vadd.f32 %v2341_v61, %v1454_v42 }
 0x2de   : > { %v1456_v44 = vpop.f32.mrf.mxu0 }
 0x2df   : > { %1508 = vst.msk [vmem:[%s2348_s25 + $0xc8] sm:$0xff] %vm1482_vm4, %v1455_v43 }
 0x2e0   : > { %v1459_v45 = vpop.f32.mrf.mxu0 }
 0x2e1   : > { %v1460_v47 = vadd.f32 %v2341_v61, %v1459_v45 }
 0x2e2   : > { %v1461_v48 = vpop.f32.mrf.mxu0 }
 0x2e3   : > { %1509 = vst.msk [vmem:[%s2348_s25 + $0xd0] sm:$0xff] %vm1482_vm4, %v1460_v47 }
 0x2e4   : > { %v1462_v49 = vpop.f32.mrf.mxu0 }
 0x2e5   : > { %v1463_v53 = vadd.f32 %v2341_v61, %v1462_v49 }
 0x2e6   : > { %v1464_v39 = vpop.f32.mrf.mxu0 }
 0x2e7   : > { %1510 = vst.msk [vmem:[%s2348_s25 + $0xd8] sm:$0xff] %vm1482_vm4, %v1463_v53 }
 0x2e8   : > { %v1467_v55 = vpop.f32.mrf.mxu0 }
 0x2e9   : > { %v1468_v51 = vadd.f32 %v2341_v61, %v1467_v55 }
 0x2ea   : > { %v1469_v6 = vpop.f32.mrf.mxu0 }
 0x2eb   : > { %1511 = vst.msk [vmem:[%s2348_s25 + $0xe0] sm:$0xff] %vm1482_vm4, %v1468_v51 }
 0x2ec   : > { %v1470_v56 = vpop.f32.mrf.mxu0 }
 0x2ed   : > { %v1471_v57 = vadd.f32 %v2341_v61, %v1470_v56 }
 0x2ee   : > { %v1472_v33 = vpop.f32.mrf.mxu0 }
 0x2ef   : > { %1512 = vst.msk [vmem:[%s2348_s25 + $0xe8] sm:$0xff] %vm1482_vm4, %v1471_v57 }
 0x2f0   : > { %v1475_v58 = vpop.f32.mrf.mxu0 }
 0x2f1   : > { %v1476_v59 = vadd.f32 %v2341_v61, %v1475_v58 }
 0x2f2   : > { %v1477_v40 = vpop.f32.mrf.mxu0 }
 0x2f3   : > { %1513 = vst.msk [vmem:[%s2348_s25 + $0xf0] sm:$0xff] %vm1482_vm4, %v1476_v59 }
 0x2f4   : > { %v1478_v60 = vpop.f32.mrf.mxu0 }
 0x2f5   : > { %v1479_v62 = vadd.f32 %v2341_v61, %v1478_v60 }
 0x2f6   : > { %v1480_v22 = vpop.f32.mrf.mxu0 }
 0x2f7   : > { %1514 = vst.msk [vmem:[%s2348_s25 + $0xf8] sm:$0xff] %vm1482_vm4, %v1479_v62 }
 0x2f8 PF: > { %s17_s24 = sadd.s32 1, %s1757_s24  }
 0x2f9   : > { %p14_p4 = scmp.ge.s32.totalorder %s17_s24, 4  }
 0x2fb   :  { %16 = sbr.rel (!%p14_p4) target bundleno = 1 (0x1), region = 78 }

</bundles_post_ra>
